<compile_context>
chip_gen: v6e
topology: v6e:2x2x1
jax: 0.10.0
libtpu: 0.0.40
codegen_flags: <defaults>
</compile_context>

<pallas_src>
import jax
import jax.numpy as jnp
from jax import lax
from jax.experimental import pallas as pl
from jax.experimental.pallas import tpu as pltpu


def _rpn_head_kernel(patch_ref, w3_ref, b3_ref, wc_ref, bc_ref, wr_ref, br_ref,
                     fc_ref, cls_ref, reg_ref):
    # patch_ref : (1, 27*C, DHW) bf16   im2col slab, DHW on the lane axis
    # w3_ref    : (F, 27*C)      bf16   flattened 3x3x3 conv weight (transposed)
    # b3_ref    : (F, 1) f32 ; wc_ref (NC, F) ; bc_ref (NC, 1) ; wr_ref (7, F) ; br_ref (7, 1)
    # fc_ref    : (1, F, DHW) f32 ; cls_ref (1, NC, DHW) ; reg_ref (1, 7, DHW)
    patch = patch_ref[0]                                          # (27C, DHW)

    # single K = 27*C MXU matmul, bf16 operands, f32 accumulation
    first = jnp.dot(w3_ref[...], patch, preferred_element_type=jnp.float32)
    first = jnp.maximum(first + b3_ref[...], 0.0)                 # (F, DHW) ReLU
    fc_ref[0] = first

    # 1x1x1 conv heads == plain matmuls over the channel dim (lane-dense output)
    cls_ref[0] = jnp.dot(wc_ref[...], first,
                         preferred_element_type=jnp.float32) + bc_ref[...]

    reg = jnp.dot(wr_ref[...], first,
                  preferred_element_type=jnp.float32) + br_ref[...]
    reg_ref[0] = reg
    # torch: bbox_pred[:, 4] = sigmoid(...); channel-3 fix is exactly an
    # elementwise abs (abs is identity on non-negatives).  With channels on the
    # sublane axis these are two cheap row stores.
    reg_ref[0, 3:4, :] = jnp.abs(reg[3:4, :])
    reg_ref[0, 4:5, :] = 1.0 / (1.0 + jnp.exp(-reg[4:5, :]))


def rpn_head_forward(x_ncdhw, params):
    w3, b3, wc, bc, wr, br = params
    N, C, D, H, W = x_ncdhw.shape
    F = w3.shape[-1]
    NC = wc.shape[-1]
    DHW = D * H * W

    # ---- wrapper-side im2col: (N, 27*C, DHW), spatial on the lane axis ----
    x_pad = jnp.pad(x_ncdhw, ((0, 0), (0, 0), (1, 1), (1, 1), (1, 1)))
    taps = []
    for kd in range(3):
        for kh in range(3):
            for kw in range(3):
                taps.append(lax.slice(x_pad, (0, 0, kd, kh, kw),
                                      (N, C, kd + D, kh + H, kw + W)))
    patches = jnp.stack(taps, axis=1)                      # (N, 27, C, D, H, W)
    patches = patches.reshape(N, 27 * C, DHW).astype(jnp.bfloat16)

    # ---- weights in the transposed (channels-on-sublane) layout ----
    w3_t = jnp.transpose(w3.reshape(27 * C, F)).astype(jnp.bfloat16)   # (F, 27C)
    b3_c = b3.reshape(F, 1).astype(jnp.float32)
    wc_t = jnp.transpose(wc).astype(jnp.float32)                        # (NC, F)
    bc_c = bc.reshape(NC, 1).astype(jnp.float32)
    wr_t = jnp.transpose(wr).astype(jnp.float32)                        # (7, F)
    br_c = br.reshape(7, 1).astype(jnp.float32)

    def full(shape):
        return pl.BlockSpec(shape, lambda n, _nd=len(shape): (0,) * _nd)

    fc_c, cls_c, reg_c = pl.pallas_call(
        _rpn_head_kernel,
        grid=(N,),
        in_specs=[
            pl.BlockSpec((1, 27 * C, DHW), lambda n: (n, 0, 0)),
            full((F, 27 * C)),
            full((F, 1)),
            full((NC, F)),
            full((NC, 1)),
            full((7, F)),
            full((7, 1)),
        ],
        out_specs=[
            pl.BlockSpec((1, F, DHW), lambda n: (n, 0, 0)),
            pl.BlockSpec((1, NC, DHW), lambda n: (n, 0, 0)),
            pl.BlockSpec((1, 7, DHW), lambda n: (n, 0, 0)),
        ],
        out_shape=[
            jax.ShapeDtypeStruct((N, F, DHW), jnp.float32),
            jax.ShapeDtypeStruct((N, NC, DHW), jnp.float32),
            jax.ShapeDtypeStruct((N, 7, DHW), jnp.float32),
        ],
        compiler_params=pltpu.CompilerParams(
            dimension_semantics=("parallel",)),
    )(patches, w3_t, b3_c, wc_t, bc_c, wr_t, br_c)

    # outputs are already channels-first; only free reshapes remain
    cls_pred = cls_c.reshape(N, NC, D, H, W)
    bbox_pred = reg_c.reshape(N, 7, D, H, W)
    first_conv = fc_c.reshape(N, F, D, H, W)
    return cls_pred, bbox_pred, first_conv


def init_params(key, C, F, NC):
    """Deterministic synthetic init matching the torch module's shapes:
    kaiming-normal-style conv weights, zero biases."""
    k1, k2, k3 = jax.random.split(key, 3)
    w3 = ((2.0 / (C * 27)) ** 0.5) * jax.random.normal(k1, (3, 3, 3, C, F), jnp.float32)
    b3 = jnp.zeros((1, F), jnp.float32)
    wc = ((2.0 / F) ** 0.5) * jax.random.normal(k2, (F, NC), jnp.float32)
    bc = jnp.zeros((1, NC), jnp.float32)
    wr = ((2.0 / F) ** 0.5) * jax.random.normal(k3, (F, 7), jnp.float32)
    br = jnp.zeros((1, 7), jnp.float32)
    return w3, b3, wc, bc, wr, br


def reference_forward(x_ncdhw, params):
    """Pure-JAX reference.  Conv operands are bf16-rounded exactly like the
    kernel (accumulation stays f32), so comparisons stay tight."""
    w3, b3, wc, bc, wr, br = params
    xb = x_ncdhw.astype(jnp.bfloat16).astype(jnp.float32)
    w3b = w3.astype(jnp.bfloat16).astype(jnp.float32)
    x = jnp.transpose(xb, (0, 2, 3, 4, 1))                        # NDHWC
    dn = lax.conv_dimension_numbers(x.shape, w3b.shape, ('NDHWC', 'DHWIO', 'NDHWC'))
    first = lax.conv_general_dilated(x, w3b, (1, 1, 1), 'SAME',
                                     dimension_numbers=dn,
                                     precision=lax.Precision.HIGHEST)
    first = jnp.maximum(first + b3[0], 0.0)
    cls = jnp.einsum('ndhwf,fk->ndhwk', first, wc,
                     precision=lax.Precision.HIGHEST) + bc[0]
    reg = jnp.einsum('ndhwf,fk->ndhwk', first, wr,
                     precision=lax.Precision.HIGHEST) + br[0]
    reg = reg.at[..., 4].set(jax.nn.sigmoid(reg[..., 4]))
    reg = reg.at[..., 3].set(jnp.abs(reg[..., 3]))
    to = lambda t: jnp.transpose(t, (0, 4, 1, 2, 3))
    return to(cls), to(reg), to(first)


if __name__ == "__main__":
    # RPNHead(num_classes=2, num_channels=4, num_feat=32)
    N, C, D, H, W = 2, 4, 8, 8, 8
    F, NC = 32, 2

    key = jax.random.PRNGKey(0)
    kx, kp = jax.random.split(key)
    x = jax.random.normal(kx, (N, C, D, H, W), jnp.float32)
    params = init_params(kp, C, F, NC)

    cls_pred, bbox_pred, first_conv = rpn_head_forward(x, params)
    jax.block_until_ready((cls_pred, bbox_pred, first_conv))

    assert cls_pred.shape == (N, NC, D, H, W)
    assert bbox_pred.shape == (N, 7, D, H, W)
    assert first_conv.shape == (N, F, D, H, W)

    cls_ref, reg_ref, first_ref = reference_forward(x, params)
    assert jnp.allclose(first_conv, first_ref, atol=1e-4, rtol=1e-4)
    assert jnp.allclose(cls_pred, cls_ref, atol=1e-4, rtol=1e-4)
    assert jnp.allclose(bbox_pred, reg_ref, atol=1e-4, rtol=1e-4)

    print("KERNEL_OK")
</pallas_src>

<mosaic_0001>
module attributes {stable_mosaic.version = 11 : i64} {
  func.func @_rpn_head_kernel(%arg0: i32, %arg1: memref<1x108x512xbf16, #tpu.memory_space<vmem>>, %arg2: memref<32x108xbf16, #tpu.memory_space<vmem>>, %arg3: memref<32x1xf32, #tpu.memory_space<vmem>>, %arg4: memref<2x32xf32, #tpu.memory_space<vmem>>, %arg5: memref<2x1xf32, #tpu.memory_space<vmem>>, %arg6: memref<7x32xf32, #tpu.memory_space<vmem>>, %arg7: memref<7x1xf32, #tpu.memory_space<vmem>>, %arg8: memref<1x32x512xf32, #tpu.memory_space<vmem>>, %arg9: memref<1x2x512xf32, #tpu.memory_space<vmem>>, %arg10: memref<1x7x512xf32, #tpu.memory_space<vmem>>) attributes {dimension_semantics = [#tpu.dimension_semantics<parallel>], iteration_bounds = array<i64: 2>, scalar_prefetch = 0 : i64, scratch_operands = 0 : i64, tpu.core_type = #tpu.core_type<tc>, window_params = [{transform_indices = @transform_0, window_bounds = array<i64: 1, 108, 512>}, {pipeline_mode = #tpu.pipeline_mode<synchronous>, transform_indices = @transform_1, window_bounds = array<i64: 32, 108>}, {pipeline_mode = #tpu.pipeline_mode<synchronous>, transform_indices = @transform_2, window_bounds = array<i64: 32, 1>}, {pipeline_mode = #tpu.pipeline_mode<synchronous>, transform_indices = @transform_3, window_bounds = array<i64: 2, 32>}, {pipeline_mode = #tpu.pipeline_mode<synchronous>, transform_indices = @transform_4, window_bounds = array<i64: 2, 1>}, {pipeline_mode = #tpu.pipeline_mode<synchronous>, transform_indices = @transform_5, window_bounds = array<i64: 7, 32>}, {pipeline_mode = #tpu.pipeline_mode<synchronous>, transform_indices = @transform_6, window_bounds = array<i64: 7, 1>}, {transform_indices = @transform_7, window_bounds = array<i64: 1, 32, 512>}, {transform_indices = @transform_8, window_bounds = array<i64: 1, 2, 512>}, {transform_indices = @transform_9, window_bounds = array<i64: 1, 7, 512>}]} {
    %c0 = arith.constant 0 : index
    %c0_0 = arith.constant 0 : index
    %c0_1 = arith.constant 0 : index
    %0 = vector.load %arg1[%c0, %c0_0, %c0_1] : memref<1x108x512xbf16, #tpu.memory_space<vmem>>, vector<1x108x512xbf16>
    %1 = vector.shape_cast %0 : vector<1x108x512xbf16> to vector<108x512xbf16>
    %c0_2 = arith.constant 0 : index
    %c0_3 = arith.constant 0 : index
    %2 = vector.load %arg2[%c0_2, %c0_3] : memref<32x108xbf16, #tpu.memory_space<vmem>>, vector<32x108xbf16>
    %cst = arith.constant dense<0.000000e+00> : vector<32x512xf32>
    %3 = tpu.matmul %2, %1, %cst {dimension_numbers = #tpu.dot_dimension_numbers<[1], [0], [0], [1], [0, 0, 1, 1], [], []>} : vector<32x108xbf16>, vector<108x512xbf16>, vector<32x512xf32> -> vector<32x512xf32>
    %c0_4 = arith.constant 0 : index
    %c0_5 = arith.constant 0 : index
    %4 = vector.load %arg3[%c0_4, %c0_5] : memref<32x1xf32, #tpu.memory_space<vmem>>, vector<32x1xf32>
    %5 = vector.broadcast %4 : vector<32x1xf32> to vector<32x512xf32>
    %6 = arith.addf %3, %5 : vector<32x512xf32>
    %cst_6 = arith.constant 0.000000e+00 : f32
    %7 = vector.broadcast %cst_6 : f32 to vector<32x512xf32>
    %8 = arith.maximumf %6, %7 : vector<32x512xf32>
    %c0_7 = arith.constant 0 : index
    %c0_8 = arith.constant 0 : index
    %c0_9 = arith.constant 0 : index
    %9 = vector.load %arg8[%c0_7, %c0_8, %c0_9] : memref<1x32x512xf32, #tpu.memory_space<vmem>>, vector<1x32x512xf32>
    %10 = vector.shape_cast %9 : vector<1x32x512xf32> to vector<32x512xf32>
    %11 = vector.shape_cast %8 : vector<32x512xf32> to vector<1x32x512xf32>
    tpu.vector_store %arg8[%c0_7, %c0_8, %c0_9], %11 {strides = array<i32>} : memref<1x32x512xf32, #tpu.memory_space<vmem>>, vector<1x32x512xf32>,
    %c0_10 = arith.constant 0 : index
    %c0_11 = arith.constant 0 : index
    %12 = vector.load %arg4[%c0_10, %c0_11] : memref<2x32xf32, #tpu.memory_space<vmem>>, vector<2x32xf32>
    %cst_12 = arith.constant dense<0.000000e+00> : vector<2x512xf32>
    %13 = tpu.matmul %12, %8, %cst_12 {dimension_numbers = #tpu.dot_dimension_numbers<[1], [0], [0], [1], [0, 0, 1, 1], [], []>} : vector<2x32xf32>, vector<32x512xf32>, vector<2x512xf32> -> vector<2x512xf32>
    %c0_13 = arith.constant 0 : index
    %c0_14 = arith.constant 0 : index
    %14 = vector.load %arg5[%c0_13, %c0_14] : memref<2x1xf32, #tpu.memory_space<vmem>>, vector<2x1xf32>
    %15 = vector.broadcast %14 : vector<2x1xf32> to vector<2x512xf32>
    %16 = arith.addf %13, %15 : vector<2x512xf32>
    %c0_15 = arith.constant 0 : index
    %c0_16 = arith.constant 0 : index
    %c0_17 = arith.constant 0 : index
    %17 = vector.load %arg9[%c0_15, %c0_16, %c0_17] : memref<1x2x512xf32, #tpu.memory_space<vmem>>, vector<1x2x512xf32>
    %18 = vector.shape_cast %17 : vector<1x2x512xf32> to vector<2x512xf32>
    %19 = vector.shape_cast %16 : vector<2x512xf32> to vector<1x2x512xf32>
    tpu.vector_store %arg9[%c0_15, %c0_16, %c0_17], %19 {strides = array<i32>} : memref<1x2x512xf32, #tpu.memory_space<vmem>>, vector<1x2x512xf32>,
    %c0_18 = arith.constant 0 : index
    %c0_19 = arith.constant 0 : index
    %20 = vector.load %arg6[%c0_18, %c0_19] : memref<7x32xf32, #tpu.memory_space<vmem>>, vector<7x32xf32>
    %cst_20 = arith.constant dense<0.000000e+00> : vector<7x512xf32>
    %21 = tpu.matmul %20, %8, %cst_20 {dimension_numbers = #tpu.dot_dimension_numbers<[1], [0], [0], [1], [0, 0, 1, 1], [], []>} : vector<7x32xf32>, vector<32x512xf32>, vector<7x512xf32> -> vector<7x512xf32>
    %c0_21 = arith.constant 0 : index
    %c0_22 = arith.constant 0 : index
    %22 = vector.load %arg7[%c0_21, %c0_22] : memref<7x1xf32, #tpu.memory_space<vmem>>, vector<7x1xf32>
    %23 = vector.broadcast %22 : vector<7x1xf32> to vector<7x512xf32>
    %24 = arith.addf %21, %23 : vector<7x512xf32>
    %c0_23 = arith.constant 0 : index
    %c0_24 = arith.constant 0 : index
    %c0_25 = arith.constant 0 : index
    %25 = vector.load %arg10[%c0_23, %c0_24, %c0_25] : memref<1x7x512xf32, #tpu.memory_space<vmem>>, vector<1x7x512xf32>
    %26 = vector.shape_cast %25 : vector<1x7x512xf32> to vector<7x512xf32>
    %27 = vector.shape_cast %24 : vector<7x512xf32> to vector<1x7x512xf32>
    tpu.vector_store %arg10[%c0_23, %c0_24, %c0_25], %27 {strides = array<i32>} : memref<1x7x512xf32, #tpu.memory_space<vmem>>, vector<1x7x512xf32>,
    %28 = vector.extract_strided_slice %24 {offsets = [3, 0], sizes = [1, 512], strides = [1, 1]} : vector<7x512xf32> to vector<1x512xf32>
    %29 = math.absf %28 : vector<1x512xf32>
    %c0_26 = arith.constant 0 : index
    %c3 = arith.constant 3 : index
    %c0_27 = arith.constant 0 : index
    %30 = vector.load %arg10[%c0_26, %c3, %c0_27] : memref<1x7x512xf32, #tpu.memory_space<vmem>>, vector<1x1x512xf32>
    %31 = vector.shape_cast %30 : vector<1x1x512xf32> to vector<1x512xf32>
    %32 = vector.shape_cast %29 : vector<1x512xf32> to vector<1x1x512xf32>
    tpu.vector_store %arg10[%c0_26, %c3, %c0_27], %32 {strides = array<i32>} : memref<1x7x512xf32, #tpu.memory_space<vmem>>, vector<1x1x512xf32>,
    %33 = vector.extract_strided_slice %24 {offsets = [4, 0], sizes = [1, 512], strides = [1, 1]} : vector<7x512xf32> to vector<1x512xf32>
    %cst_28 = arith.constant 0.000000e+00 : f32
    %34 = vector.broadcast %cst_28 : f32 to vector<1x512xf32>
    %35 = arith.subf %34, %33 : vector<1x512xf32>
    %36 = math.exp %35 : vector<1x512xf32>
    %cst_29 = arith.constant 1.000000e+00 : f32
    %37 = vector.broadcast %cst_29 : f32 to vector<1x512xf32>
    %38 = arith.addf %37, %36 : vector<1x512xf32>
    %cst_30 = arith.constant 1.000000e+00 : f32
    %39 = vector.broadcast %cst_30 : f32 to vector<1x512xf32>
    %40 = arith.divf %39, %38 : vector<1x512xf32>
    %c0_31 = arith.constant 0 : index
    %c4 = arith.constant 4 : index
    %c0_32 = arith.constant 0 : index
    %41 = vector.load %arg10[%c0_31, %c4, %c0_32] : memref<1x7x512xf32, #tpu.memory_space<vmem>>, vector<1x1x512xf32>
    %42 = vector.shape_cast %41 : vector<1x1x512xf32> to vector<1x512xf32>
    %43 = vector.shape_cast %40 : vector<1x512xf32> to vector<1x1x512xf32>
    tpu.vector_store %arg10[%c0_31, %c4, %c0_32], %43 {strides = array<i32>} : memref<1x7x512xf32, #tpu.memory_space<vmem>>, vector<1x1x512xf32>,
    return
  }
  func.func @transform_0(%arg0: i32) -> (i32, i32, i32) {
    %c0_i32 = arith.constant 0 : i32
    %c0_i32_0 = arith.constant 0 : i32
    %c0_i32_1 = arith.constant 0 : i32
    return %arg0, %c0_i32, %c0_i32_0 : i32, i32, i32
  }
  func.func @transform_1(%arg0: i32) -> (i32, i32) {
    %c0_i32 = arith.constant 0 : i32
    %c0_i32_0 = arith.constant 0 : i32
    %c0_i32_1 = arith.constant 0 : i32
    return %c0_i32, %c0_i32_0 : i32, i32
  }
  func.func @transform_2(%arg0: i32) -> (i32, i32) {
    %c0_i32 = arith.constant 0 : i32
    %c0_i32_0 = arith.constant 0 : i32
    %c0_i32_1 = arith.constant 0 : i32
    return %c0_i32, %c0_i32_0 : i32, i32
  }
  func.func @transform_3(%arg0: i32) -> (i32, i32) {
    %c0_i32 = arith.constant 0 : i32
    %c0_i32_0 = arith.constant 0 : i32
    %c0_i32_1 = arith.constant 0 : i32
    return %c0_i32, %c0_i32_0 : i32, i32
  }
  func.func @transform_4(%arg0: i32) -> (i32, i32) {
    %c0_i32 = arith.constant 0 : i32
    %c0_i32_0 = arith.constant 0 : i32
    %c0_i32_1 = arith.constant 0 : i32
    return %c0_i32, %c0_i32_0 : i32, i32
  }
  func.func @transform_5(%arg0: i32) -> (i32, i32) {
    %c0_i32 = arith.constant 0 : i32
    %c0_i32_0 = arith.constant 0 : i32
    %c0_i32_1 = arith.constant 0 : i32
    return %c0_i32, %c0_i32_0 : i32, i32
  }
  func.func @transform_6(%arg0: i32) -> (i32, i32) {
    %c0_i32 = arith.constant 0 : i32
    %c0_i32_0 = arith.constant 0 : i32
    %c0_i32_1 = arith.constant 0 : i32
    return %c0_i32, %c0_i32_0 : i32, i32
  }
  func.func @transform_7(%arg0: i32) -> (i32, i32, i32) {
    %c0_i32 = arith.constant 0 : i32
    %c0_i32_0 = arith.constant 0 : i32
    %c0_i32_1 = arith.constant 0 : i32
    return %arg0, %c0_i32, %c0_i32_0 : i32, i32, i32
  }
  func.func @transform_8(%arg0: i32) -> (i32, i32, i32) {
    %c0_i32 = arith.constant 0 : i32
    %c0_i32_0 = arith.constant 0 : i32
    %c0_i32_1 = arith.constant 0 : i32
    return %arg0, %c0_i32, %c0_i32_0 : i32, i32, i32
  }
  func.func @transform_9(%arg0: i32) -> (i32, i32, i32) {
    %c0_i32 = arith.constant 0 : i32
    %c0_i32_0 = arith.constant 0 : i32
    %c0_i32_1 = arith.constant 0 : i32
    return %arg0, %c0_i32, %c0_i32_0 : i32, i32, i32
  }
}

</mosaic_0001>

<bundles_post_ra>
// kernel: tpu_custom_call.1
= control target key start
LH: loop header
LB: loop body
LE: loop exit
PB: predicated region body
PF: predicated region fallthrough
CT: control target
= control target key end

     0   :  { %s1916_s0 = inlined_call_operand.vmem [shape: bf16[2,108,512], index: 0, kind: input, shape index: {}]   ;;  %s1917_s1 = inlined_call_operand.vmem [shape: bf16[32,108], index: 1, kind: input, shape index: {}]   ;;  %s1918_s2 = inlined_call_operand.vmem [shape: f32[32,1], index: 2, kind: input, shape index: {}]   ;;  %s1919_s3 = inlined_call_operand.vmem [shape: f32[2,32], index: 3, kind: input, shape index: {}]   ;;  %s1920_s4 = inlined_call_operand.vmem [shape: f32[2,1], index: 4, kind: input, shape index: {}]   ;;  %s1921_s5 = inlined_call_operand.vmem [shape: f32[7,32], index: 5, kind: input, shape index: {}]   ;;  %s1922_s6 = inlined_call_operand.vmem [shape: f32[7,1], index: 6, kind: input, shape index: {}]   ;;  %s1923_s7 = inlined_call_operand.hbm [shape: f32[2,32,512], index: 7, kind: output, shape index: {0}]   ;;  %s1924_s8 = inlined_call_operand.hbm [shape: f32[2,2,512], index: 8, kind: output, shape index: {1}]   ;;  %s1925_s9 = inlined_call_operand.vmem [shape: f32[2,7,512], index: 9, kind: output, shape index: {2}]  }
   0x1   :  { %1926 = sst [smem:[#allocation8_spill]] %s1916_s0 }
   0x2   :  { %15 = vsyncpa [#allocation3], 0 }
   0x3   :  { %17 = vsyncpa [#allocation3 + $0x1], 0 }
   0x4   :  { %18 = vsyncpa [#allocation5], 0 }
   0x5   :  { %20 = vsyncpa [#allocation5 + $0x1], 0  ;;  %s1629_s30 = smov 0   ;;  %s1631_s10 = smov 0  }
   0x6   :  { %s1633_s11 = smov 0   ;;  %s1635_s12 = smov 0  }
   0x7 LB: > { %s1650_s13 = sadd.s32 4294967295, %s1569_s12   ;;  %s1304_s14 = sadd.s32 4294967294, %s1569_s12   ;;  %s1569_s12 = sphi %s1635_s12, %s1936_s12   ;;  %s1565_s11 = sphi %s1633_s11, %s1935_s11   ;;  %s1561_s10 = sphi %s1631_s10, %s1934_s10   ;;  %s1557_s30 = sphi %s1629_s30, %s1933_s30  }
   0x8   : > { %s1654_s15 = sadd.s32 1, %s1569_s12   ;;  %s185_s16 = sadd.s32 1, %s1565_s11 }
   0x9   : > { %s182_s17 = ssub.s32 %s1569_s12, %s1654_s15  ;;  %p195_p0 = scmp.ne.s32.totalorder %s1565_s11, %s1561_s10 }
   0xa   : > { %p183_p1 = scmp.eq.s32.totalorder %s182_s17, 0  ;;  %p196_p2 = scmp.eq.s32.totalorder %s1650_s13, 1 }
   0xb   : > { %p201_p3 = scmp.ne.s32.totalorder %s1561_s10, %s1557_s30  ;;  %p202_p4 = scmp.eq.s32.totalorder %s1304_s14, 1 }
   0xc   : > { %s1665_s18 = scalar_select %p183_p1, %s1565_s11, %s185_s16  }
   0xd   : > { %p1667_p5 = por %p196_p2, %p195_p0  ;;  %p1671_p6 = por %p202_p4, %p201_p3 }
   0xe   : > { %p1307_p7 = scmp.ge.s32.totalorder %s1569_s12, 1  ;;  %p298_p8 = scmp.lt.s32.totalorder %s1569_s12, 3 }
  0x10   : > { %p299_p9 = pnand %p1307_p7, %p298_p8 }
  0x11   : > { %p344_p10 = scmp.lt.s32.totalorder (!%p299_p9), %s1650_s13, 1  ;;  %s1929_s0 = sld [smem:[#allocation8_spill]] (!%p299_p9) }
  0x12   : > { %302 = sbr.rel (%p299_p9) target bundleno = 540 (0x21c), region = 48  ;;  %s1748_s16 = sand.u32 (!%p299_p9), 1, %s1561_s10  }
  0x13   : > { %s1308_s17 = sshll.u32 (!%p299_p9), %s1748_s16, 7  ;;  %s1364_s27 = sshll.u32 (!%p299_p9), %s1650_s13, 11 }
  0x14   : > { %s1573_s25 = smov (!%p299_p9), [#allocation2]  }
  0x17   : > { %v1571_v0 = vmov 0   ;;  %s1681_s21 = scalar_select %p344_p10, %s1650_s13, 1  ;;  %v388_v1 = vld [vmem:[%s1918_s2 + $0x8] sm:$0xff]  ;;  %v390_v2 = vld [vmem:[%s1918_s2 + $0x18] sm:$0xff]  ;;  %v387_v3 = vld [vmem:[%s1918_s2] sm:$0xff]  ;;  %vm564_vm0 = vcmask 1045504  }
  0x18   : > { %609 = vmatprep.mubr.bf16.mxu0 %v1571_v0  ;;  %662 = vmatprep.mubr.bf16.mxu1 %v1571_v0  ;;  %v389_v4 = vld [vmem:[%s1918_s2 + $0x10] sm:$0xff]  ;;  %v716_v5 = vld [vmem:[%s1920_s4] sm:$0x3]  ;;  %vm557_vm1 = vcmask 883712   ;;  %v1462_v38 = vld [vmem:[%s1917_s1 + $0x8] sm:$0xff]   ;;  %v1572_v39 = vmov 0.0  }
  0x19   : > { %1418 = vset.pattern.permute.xlu1 %v1571_v0  ;;  %1417 = vset.pattern.permute.xlu0 %v1571_v0  ;;  %s1366_s26 = smul.u32 224, %s1681_s21  ;;  %v892_v10 = vld [vmem:[%s1922_s6] sm:$0x7f]  ;;  %vm722_vm2 = vcmask 261120  }
  0x1a   : > { %398 = vperm.xlu1 %1418, %v388_v1   ;;  %408 = vperm.xlu0 %1417, %v390_v2   ;;  %v1461_v37 = vld [vmem:[%s1917_s1] sm:$0xff]  }
  0x1b   : > { %s1701_s22 = scalar_lea.vmem %s1929_s0, %s1366_s26  ;;  %s1483_s26 = sshll.u32 %s1573_s25, 4  ;;  %s1484_s26 = int_to_ptr.vmem [resolvable:$false] %s1483_s26 }
  0x1c   : > { %v1419_v6 = vld [vmem:[%s1701_s22 + $0xc4] ss:$16 sps:$4 sm:$0x3f]   ;;  %v1421_v7 = vld [vmem:[%s1701_s22 + $0xcc] ss:$16 sps:$4 sm:$0x3f]  }
  0x1d   : > { %1343 = vmatprep.subr.msk.bf16.mxu0 %vm564_vm0, %v1419_v6  ;;  %v1423_v8 = vld [vmem:[%s1701_s22 + $0xc0] ss:$16 sps:$4 sm:$0x3f]   ;;  %v1424_v9 = vld [vmem:[%s1701_s22 + $0xc8] ss:$16 sps:$4 sm:$0x3f]   ;;  %1346 = vmatprep.subr.msk.bf16.mxu1 %vm564_vm0, %v1421_v7 }
  0x1e   : > { %393 = vperm.xlu1 %1418, %v387_v3   ;;  %403 = vperm.xlu0 %1417, %v389_v4   ;;  %v1425_v11 = vld [vmem:[%s1701_s22 + $0xa4] ss:$16 sps:$4 sm:$0xff]   ;;  %v566_v12 = vsel %vm564_vm0, %v1423_v8, 0  ;;  %v572_v13 = vsel %vm564_vm0, %v1424_v9, 0  ;;  %v1427_v14 = vld [vmem:[%s1701_s22 + $0xac] ss:$16 sps:$4 sm:$0xff]  }
  0x1f   : > { %580 = vmatpush1.bf16.msra.mxu0 %v566_v12  ;;  %633 = vmatpush1.bf16.msra.mxu1 %v572_v13  ;;  %v1429_v15 = vld [vmem:[%s1701_s22 + $0xa0] ss:$16 sps:$4 sm:$0xff]   ;;  %v1430_v16 = vld [vmem:[%s1701_s22 + $0xa8] ss:$16 sps:$4 sm:$0xff]   ;;  %v1431_v17 = vld [vmem:[%s1701_s22 + $0x84] ss:$16 sps:$4 sm:$0xff]  }
  0x20   : > { %581 = vmatprep.subr.bf16.mxu0 %v1425_v11  ;;  %634 = vmatprep.subr.bf16.mxu1 %v1427_v14  ;;  %v1433_v18 = vld [vmem:[%s1701_s22 + $0x8c] ss:$16 sps:$4 sm:$0xff]   ;;  %v1435_v19 = vld [vmem:[%s1701_s22 + $0x80] ss:$16 sps:$4 sm:$0xff]   ;;  %v1436_v20 = vld [vmem:[%s1701_s22 + $0x88] ss:$16 sps:$4 sm:$0xff]  }
  0x21   : > { %v1437_v21 = vld [vmem:[%s1701_s22 + $0x64] ss:$16 sps:$4 sm:$0xff]   ;;  %v1439_v22 = vld [vmem:[%s1701_s22 + $0x6c] ss:$16 sps:$4 sm:$0xff]   ;;  %v1441_v23 = vld [vmem:[%s1701_s22 + $0x60] ss:$16 sps:$4 sm:$0xff]  }
  0x22   : > { %719 = vperm.xlu1 %1418, %v716_v5   ;;  %895 = vperm.xlu0 %1417, %v892_v10   ;;  %v1442_v24 = vld [vmem:[%s1701_s22 + $0x68] ss:$16 sps:$4 sm:$0xff]   ;;  %v1443_v25 = vld [vmem:[%s1701_s22 + $0x44] ss:$16 sps:$4 sm:$0xff]   ;;  %v1445_v26 = vld [vmem:[%s1701_s22 + $0x4c] ss:$16 sps:$4 sm:$0xff]  }
  0x23   : > { %582 = vmatpush1.bf16.msra.mxu0 %v1429_v15  ;;  %635 = vmatpush1.bf16.msra.mxu1 %v1430_v16  ;;  %v1447_v27 = vld [vmem:[%s1701_s22 + $0x40] ss:$16 sps:$4 sm:$0xff]   ;;  %v1448_v28 = vld [vmem:[%s1701_s22 + $0x48] ss:$16 sps:$4 sm:$0xff]   ;;  %v1449_v29 = vld [vmem:[%s1701_s22 + $0x24] ss:$16 sps:$4 sm:$0xff]  }
  0x24   : > { %583 = vmatprep.subr.bf16.mxu0 %v1431_v17  ;;  %636 = vmatprep.subr.bf16.mxu1 %v1433_v18  ;;  %v1451_v30 = vld [vmem:[%s1701_s22 + $0x2c] ss:$16 sps:$4 sm:$0xff]   ;;  %v1453_v31 = vld [vmem:[%s1701_s22 + $0x20] ss:$16 sps:$4 sm:$0xff]   ;;  %v1454_v32 = vld [vmem:[%s1701_s22 + $0x28] ss:$16 sps:$4 sm:$0xff]  }
  0x25   : > { %v1455_v33 = vld [vmem:[%s1701_s22 + $0x4] ss:$16 sps:$4 sm:$0xff]   ;;  %v1457_v34 = vld [vmem:[%s1701_s22 + $0xc] ss:$16 sps:$4 sm:$0xff]   ;;  %v1459_v35 = vld [vmem:[%s1701_s22] ss:$16 sps:$4 sm:$0xff]  }
  0x26   : > { %v1460_v36 = vld [vmem:[%s1701_s22 + $0x8] ss:$16 sps:$4 sm:$0xff]   ;;  %s1755_s22 = scalar_lea.vmem [#allocation2], %s1308_s17  ;;  %s1816_s17 = scalar_lea.hbm %s1923_s7, %s1364_s27 }
  0x27   : > { %584 = vmatpush1.bf16.msra.mxu0 %v1435_v19  ;;  %637 = vmatpush1.bf16.msra.mxu1 %v1436_v20  ;;  %s1168_s28 = sshll.u32 %s1755_s22, 4  ;;  %s1818_s28 = int_to_ptr.vmem [resolvable:$true] %s1168_s28 }
  0x28   : > { %585 = vmatprep.subr.bf16.mxu0 %v1437_v21  ;;  %638 = vmatprep.subr.bf16.mxu1 %v1439_v22  ;;  %s1479_s24 = scalar_lea.vmem %s1818_s28, 2048  ;;  %p1486_p0 = scmp.lt.s32.totalorder %s1818_s28, %s1484_s26 }
  0x29   : > { %p1480_p11 = scmp.ne.s32.totalorder %s1818_s28, %s1479_s24 }
  0x2b   : > { %586 = vmatpush1.bf16.msra.mxu0 %v1441_v23  ;;  %639 = vmatpush1.bf16.msra.mxu1 %v1442_v24  ;;  %p1481_p12 = pnand %p1480_p11, %p1667_p5 }
  0x2c   : > { %587 = vmatprep.subr.bf16.mxu0 %v1443_v25  ;;  %640 = vmatprep.subr.bf16.mxu1 %v1445_v26 }
  0x2d   : > { %p1482_p13 = pneg %p1481_p12 }
  0x2f   : > { %588 = vmatpush1.bf16.msra.mxu0 %v1447_v27  ;;  %641 = vmatpush1.bf16.msra.mxu1 %v1448_v28  ;;  %v715_v28 = vld [vmem:[%s1919_s3] sm:$0x3] }
  0x30   : > { %589 = vmatprep.subr.bf16.mxu0 %v1449_v29  ;;  %642 = vmatprep.subr.bf16.mxu1 %v1451_v30  ;;  %v891_v29 = vld [vmem:[%s1921_s5] sm:$0x7f] }
  0x33   : > { %590 = vmatpush1.bf16.msra.mxu0 %v1453_v31  ;;  %643 = vmatpush1.bf16.msra.mxu1 %v1454_v32 }
  0x34   : > { %591 = vmatprep.subr.bf16.mxu0 %v1455_v33  ;;  %644 = vmatprep.subr.bf16.mxu1 %v1457_v34 }
  0x37   : > { %592 = vmatpush1.bf16.msra.mxu0 %v1459_v35  ;;  %645 = vmatpush1.bf16.msra.mxu1 %v1460_v36 }
  0x3a   : > { %1344 = vmatmul.mubr.msk.bf16.vlgmr.msra.gmra.mxu0 %vm557_vm1, %v1461_v37  ;;  %1347 = vmatmul.mubr.msk.bf16.vlgmr.msra.gmra.mxu1 %vm557_vm1, %v1461_v37 }
  0x3b   : > { %619 = vmatprep.mubr.bf16.mxu0 %v1571_v0  ;;  %672 = vmatprep.mubr.bf16.mxu1 %v1571_v0 }
  0x42   : > { %1345 = vmatmul.mubr.msk.bf16.gmra.mxu0 %vm557_vm1, %v1462_v38  ;;  %1348 = vmatmul.mubr.msk.bf16.gmra.mxu1 %vm557_vm1, %v1462_v38 }
  0x43   : > { %790 = vmatprep.mubr.f32.mxu0 %v1572_v39  ;;  %861 = vmatprep.mubr.f32.mxu1 %v1572_v39 }
  0x95   : > { %v399_v40 = vpop.permute.xlu1 %398  ;;  %v409_v42 = vpop.permute.xlu0 %408 }
  0x99   : > { %v394_v41 = vpop.permute.xlu1 %393  ;;  %v404_v59 = vpop.permute.xlu0 %403 }
  0xfa   : > { %v611_v43 = vpop.f32.mrf.mxu0  ;;  %v664_v44 = vpop.f32.mrf.mxu1 }
  0xfb   : > { %v612_v45 = vadd.f32 %v611_v43, %v394_v41  ;;  %v665_v46 = vadd.f32 %v664_v44, %v394_v41 }
  0xfc   : > { %v613_v47 = vpop.f32.mrf.mxu0  ;;  %v666_v48 = vpop.f32.mrf.mxu1 }
  0xfd   : > { %v1751_v49 = vmax.f32 %v612_v45, 0.0  ;;  %v1753_v50 = vmax.f32 %v665_v46, 0.0  ;;  %v614_v51 = vadd.f32 %v613_v47, %v394_v41  ;;  %v667_v52 = vadd.f32 %v666_v48, %v394_v41 }
  0xfe   : > { %v615_v53 = vpop.f32.mrf.mxu0  ;;  %v668_v54 = vpop.f32.mrf.mxu1 }
  0xff   : > { %699 = vst [vmem:[%s1755_s22] sm:$0xff] %v1751_v49  ;;  %701 = vst [vmem:[%s1755_s22 + $0x10] sm:$0xff] %v1753_v50  ;;  %v1761_v55 = vmax.f32 %v614_v51, 0.0  ;;  %v1763_v56 = vmax.f32 %v667_v52, 0.0  ;;  %v616_v57 = vadd.f32 %v615_v53, %v399_v40  ;;  %v669_v58 = vadd.f32 %v668_v54, %v399_v40 }
 0x100   : > { %v617_v60 = vpop.f32.mrf.mxu0  ;;  %v670_v61 = vpop.f32.mrf.mxu1 }
 0x101   : > { %700 = vst [vmem:[%s1755_s22 + $0x8] sm:$0xff] %v1761_v55  ;;  %702 = vst [vmem:[%s1755_s22 + $0x18] sm:$0xff] %v1763_v56  ;;  %v1769_v62 = vmax.f32 %v616_v57, 0.0  ;;  %v1771_v63 = vmax.f32 %v669_v58, 0.0  ;;  %v618_v0 = vadd.f32 %v617_v60, %v399_v40  ;;  %v671_v1 = vadd.f32 %v670_v61, %v399_v40 }
 0x102   : > { %v621_v2 = vpop.f32.mrf.mxu0  ;;  %v674_v3 = vpop.f32.mrf.mxu1 }
 0x103   : > { %703 = vst [vmem:[%s1755_s22 + $0x20] sm:$0xff] %v1769_v62  ;;  %705 = vst [vmem:[%s1755_s22 + $0x30] sm:$0xff] %v1771_v63  ;;  %v688_v4 = vmax.f32 %v618_v0, 0.0  ;;  %v690_v5 = vmax.f32 %v671_v1, 0.0  ;;  %v622_v6 = vadd.f32 %v621_v2, %v404_v59  ;;  %v675_v7 = vadd.f32 %v674_v3, %v404_v59 }
 0x104   : > { %v623_v8 = vpop.f32.mrf.mxu0  ;;  %v676_v9 = vpop.f32.mrf.mxu1 }
 0x105   : > { %704 = vst [vmem:[%s1755_s22 + $0x28] sm:$0xff] %v688_v4  ;;  %706 = vst [vmem:[%s1755_s22 + $0x38] sm:$0xff] %v690_v5  ;;  %v691_v10 = vmax.f32 %v622_v6, 0.0  ;;  %v693_v11 = vmax.f32 %v675_v7, 0.0  ;;  %v624_v12 = vadd.f32 %v623_v8, %v404_v59  ;;  %v677_v13 = vadd.f32 %v676_v9, %v404_v59 }
 0x106   : > { %v625_v14 = vpop.f32.mrf.mxu0  ;;  %v678_v15 = vpop.f32.mrf.mxu1 }
 0x107   : > { %707 = vst [vmem:[%s1755_s22 + $0x40] sm:$0xff] %v691_v10  ;;  %709 = vst [vmem:[%s1755_s22 + $0x50] sm:$0xff] %v693_v11  ;;  %v692_v16 = vmax.f32 %v624_v12, 0.0  ;;  %v694_v17 = vmax.f32 %v677_v13, 0.0  ;;  %v626_v18 = vadd.f32 %v625_v14, %v409_v42  ;;  %v679_v19 = vadd.f32 %v678_v15, %v409_v42 }
 0x108   : > { %v627_v20 = vpop.f32.mrf.mxu0  ;;  %v680_v21 = vpop.f32.mrf.mxu1 }
 0x109   : > { %708 = vst [vmem:[%s1755_s22 + $0x48] sm:$0xff] %v692_v16  ;;  %710 = vst [vmem:[%s1755_s22 + $0x58] sm:$0xff] %v694_v17  ;;  %v695_v22 = vmax.f32 %v626_v18, 0.0  ;;  %v697_v23 = vmax.f32 %v679_v19, 0.0  ;;  %v628_v24 = vadd.f32 %v627_v20, %v409_v42  ;;  %v681_v25 = vadd.f32 %v680_v21, %v409_v42 }
 0x10b   : > { %711 = vst [vmem:[%s1755_s22 + $0x60] sm:$0xff] %v695_v22  ;;  %713 = vst [vmem:[%s1755_s22 + $0x70] sm:$0xff] %v697_v23  ;;  %v696_v26 = vmax.f32 %v628_v24, 0.0  ;;  %v698_v27 = vmax.f32 %v681_v25, 0.0 }
 0x10d   : > { %712 = vst [vmem:[%s1755_s22 + $0x68] sm:$0xff] %v696_v26  ;;  %714 = vst [vmem:[%s1755_s22 + $0x78] sm:$0xff] %v698_v27  ;;  %750 = vmatprep.subr.mxu0 %v696_v26  ;;  %821 = vmatprep.subr.mxu1 %v698_v27  ;;  %s1485_s22 = scalar_lea.vmem %s1484_s26, 4096 }
 0x10e   : > { %751 = vmatpush1.msra.mxu0 %v695_v22  ;;  %822 = vmatpush1.msra.mxu1 %v697_v23  ;;  %p1487_p1 = scmp.lt.s32.totalorder %s1485_s22, %s1479_s24 }
 0x10f   : > { %752 = vmatprep.subr.mxu0 %v692_v16  ;;  %823 = vmatprep.subr.mxu1 %v694_v17 }
 0x110   : > { %753 = vmatpush1.msra.mxu0 %v691_v10  ;;  %824 = vmatpush1.msra.mxu1 %v693_v11  ;;  %p1488_p2 = por %p1487_p1, %p1486_p0 }
 0x111   : > { %754 = vmatprep.subr.mxu0 %v688_v4  ;;  %825 = vmatprep.subr.mxu1 %v690_v5 }
 0x112   : > { %755 = vmatpush1.msra.mxu0 %v1769_v62  ;;  %826 = vmatpush1.msra.mxu1 %v1771_v63  ;;  %p1489_p3 = pnand %p1488_p2, %p1482_p13 }
 0x113   : > { %756 = vmatprep.subr.mxu0 %v1761_v55  ;;  %827 = vmatprep.subr.mxu1 %v1763_v56 }
 0x114   : > { %757 = vmatpush1.msra.mxu0 %v1751_v49  ;;  %828 = vmatpush1.msra.mxu1 %v1753_v50 }
 0x115   : > { %1349 = vmatmul.mubr.msk.f32.vlgmr.msra.gmra.mxu0 %vm722_vm2, %v715_v28  ;;  %1350 = vmatmul.mubr.msk.f32.vlgmr.msra.gmra.mxu1 %vm722_vm2, %v715_v28 }
 0x116   : > { %925 = vmatprep.subr.mxu0 %v696_v26  ;;  %996 = vmatprep.subr.mxu1 %v698_v27 }
 0x117   : > { %926 = vmatpush1.msra.mxu0 %v695_v22  ;;  %997 = vmatpush1.msra.mxu1 %v697_v23 }
 0x118   : > { %927 = vmatprep.subr.mxu0 %v692_v16  ;;  %998 = vmatprep.subr.mxu1 %v694_v17 }
 0x119   : > { %928 = vmatpush1.msra.mxu0 %v691_v10  ;;  %999 = vmatpush1.msra.mxu1 %v693_v11 }
 0x11a   : > { %929 = vmatprep.subr.mxu0 %v688_v4  ;;  %1000 = vmatprep.subr.mxu1 %v690_v5 }
 0x11b   : > { %930 = vmatpush1.msra.mxu0 %v1769_v62  ;;  %1001 = vmatpush1.msra.mxu1 %v1771_v63 }
 0x11c   : > { %931 = vmatprep.subr.mxu0 %v1761_v55  ;;  %1002 = vmatprep.subr.mxu1 %v1763_v56 }
 0x11d   : > { %932 = vmatpush1.msra.mxu0 %v1751_v49  ;;  %965 = vmatprep.mubr.f32.mxu0 %v1572_v39 }
 0x11e   : > { %1003 = vmatpush1.msra.mxu1 %v1753_v50  ;;  %1036 = vmatprep.mubr.f32.mxu1 %v1572_v39 }
 0x11f   : > { %1351 = vmatmul.mubr.msk.f32.vlgmr.msra.gmra.mxu0 %vm722_vm2, %v891_v29  ;;  %1352 = vmatmul.mubr.msk.f32.vlgmr.msra.gmra.mxu1 %vm722_vm2, %v891_v29 }
 0x120   : > { %1492 = shalt.err (!%p1489_p3)
}
 0x121   : > { %s1493_s27 = scalar_lea.hbm %s1816_s17, 2048  ;;  %s1497_s25 = scalar_lea.hbm %s1923_s7, 4096 }
 0x122   : > { %p1494_p4 = scmp.ne.s32.totalorder %s1816_s17, %s1493_s27  ;;  %p1498_p9 = scmp.lt.s32.totalorder %s1816_s17, %s1923_s7 }
 0x123   : > { %p1499_p10 = scmp.lt.s32.totalorder %s1497_s25, %s1493_s27 }
 0x124   : > { %p1495_p7 = pnand %p1494_p4, %p1667_p5 }
 0x125   : > { %p1500_p11 = por %p1499_p10, %p1498_p9 }
 0x126   : > { %p1496_p8 = pneg %p1495_p7 }
 0x128   : > { %p1501_p12 = pnand %p1500_p11, %p1496_p8 }
 0x12a   : > { %1504 = shalt.err (!%p1501_p12)
}
 0x12b   : > { %s1574_s24 = smov 512   ;;  %s1575_s26 = smov 32   ;;  %v1576_v30 = vmov 1983009808   ;;  %v877_v32 = vlaneseq  ;;  %v720_v37 = vpop.permute.xlu1 %719  ;;  %v1577_v48 = vmov 1966171168   ;;  %v896_v51 = vpop.permute.xlu0 %895 }
 0x12c   : > { %s1930_s22 = scalar_lea.sflag [#allocation3], %s1748_s16  ;;  %v875_v31 = vunpack.c.l.s4 %v1576_v30  ;;  %s1309_s0 = sshll.u32 %s1748_s16, 3  ;;  %v1058_v49 = vunpack.c.l.s4 %v1577_v48 }
 0x12d   : > { %1367 = dma.vmem_to_hbm [thread:$0]  (%p1667_p5), %s1818_s28, 2048, %s1816_s17, %s1930_s22, %s1574_s24, %s1574_s24, %s1575_s26   ;;  %v1844_v34 = vshrl.u32 %v877_v32, 7 }
 0x12e   : > { %v876_v33 = vunpack.c.0.s8 %v875_v31  ;;  %s1365_s28 = sshll.u32 %s1650_s13, 7  ;;  %s336_s17 = scalar_lea.vmem [#allocation4], %s1309_s0  ;;  %v1059_v55 = vunpack.c.0.s8 %v1058_v49 }
 0x12f   : > { %s1185_s23 = sshll.u32 %s336_s17, 4  ;;  %s1363_s27 = sshll.u32 %s1681_s21, 5  ;;  %s1855_s23 = int_to_ptr.vmem [resolvable:$true] %s1185_s23 }
 0x130   : > { %v879_v39 = vsub.s32 %v876_v33, %v1844_v34  ;;  %s1853_s25 = scalar_lea.hbm %s1924_s8, %s1365_s28  ;;  %s1860_s26 = scalar_lea.vmem %s1925_s9, %s1363_s27 }
 0x131   : > { %s1150_s21 = scalar_lea.sflag [#allocation5], %s1748_s16  ;;  %s1505_s22 = scalar_lea.vmem %s1855_s23, 128 }
 0x132   : > { %p1506_p13 = scmp.ne.s32.totalorder %s1855_s23, %s1505_s22  ;;  %s1578_s0 = smov [#allocation4]  }
 0x133   : > { %s1509_s28 = sshll.u32 %s1578_s0, 4  ;;  %s1510_s28 = int_to_ptr.vmem [resolvable:$false] %s1509_s28 }
 0x134   : > { %p1507_p0 = pnand %p1506_p13, %p1667_p5  ;;  %s1511_s27 = scalar_lea.vmem %s1510_s28, 256 }
 0x135   : > { %p1512_p2 = scmp.lt.s32.totalorder %s1855_s23, %s1510_s28  ;;  %p1513_p3 = scmp.lt.s32.totalorder %s1511_s27, %s1505_s22 }
 0x136   : > { %p1508_p1 = pneg %p1507_p0 }
 0x137   : > { %p1514_p4 = por %p1513_p3, %p1512_p2 }
 0x139   : > { %p1515_p7 = pnand %p1514_p4, %p1508_p1 }
 0x1d5   : > { %v792_v35 = vpop.f32.mrf.mxu0  ;;  %v863_v36 = vpop.f32.mrf.mxu1 }
 0x1d6   : > { %v793_v41 = vadd.f32 %v792_v35, %v720_v37  ;;  %v864_v42 = vadd.f32 %v863_v36, %v720_v37 }
 0x1d7   : > { %v794_v38 = vpop.f32.mrf.mxu0  ;;  %v865_v40 = vpop.f32.mrf.mxu1 }
 0x1d8   : > { %v795_v43 = vadd.f32 %v794_v38, %v720_v37  ;;  %v866_v44 = vadd.f32 %v865_v40, %v720_v37 }
 0x1da   : > { %v872_v45 = vcombine.low %v793_v41, %v795_v43  ;;  %v873_v46 = vcombine.low %v864_v42, %v866_v44 }
 0x1dc   : > { %v880_v47 = vrot.slane %v872_v45, %v879_v39  ;;  %v887_v50 = vrot.slane %v873_v46, %v879_v39 }
 0x1de   : > { %v888_v52 = vcombine.low %v880_v47, %v887_v50 }
 0x1df   : > { %v967_v53 = vpop.f32.mrf.mxu0  ;;  %v1038_v54 = vpop.f32.mrf.mxu1 }
 0x1e0   : > { %v968_v56 = vadd.f32 %v967_v53, %v896_v51  ;;  %v1039_v57 = vadd.f32 %v1038_v54, %v896_v51  ;;  %890 = vst [vmem:[%s336_s17] sm:$0xff] %v888_v52 }
 0x1e1   : > { %v969_v58 = vpop.f32.mrf.mxu0  ;;  %v1040_v59 = vpop.f32.mrf.mxu1 }
 0x1e2   : > { %1518 = shalt.err (!%p1515_p7)
}
 0x1e3   : > { %s1519_s17 = scalar_lea.hbm %s1853_s25, 128  ;;  %s1523_s14 = scalar_lea.hbm %s1924_s8, 256 }
 0x1e4   : > { %p1520_p8 = scmp.ne.s32.totalorder %s1853_s25, %s1519_s17  ;;  %p1524_p11 = scmp.lt.s32.totalorder %s1853_s25, %s1924_s8 }
 0x1e5   : > { %p1525_p12 = scmp.lt.s32.totalorder %s1523_s14, %s1519_s17 }
 0x1e6   : > { %p1521_p9 = pnand %p1520_p8, %p1667_p5 }
 0x1e7   : > { %p1526_p13 = por %p1525_p12, %p1524_p11 }
 0x1e8   : > { %p1522_p10 = pneg %p1521_p9 }
 0x1ea   : > { %p1527_p0 = pnand %p1526_p13, %p1522_p10 }
 0x1ec   : > { %1530 = shalt.err (!%p1527_p0)
}
 0x1ed   : > { %1368 = dma.vmem_to_hbm [thread:$0]  (%p1667_p5), %s1855_s23, 128, %s1853_s25, %s1150_s21   ;;  %1043 = vst [vmem:[%s1860_s26] sm:$0x7f] %v968_v56  ;;  %v1088_v60 = vsub.f32 0.0, %v968_v56  ;;  %1045 = vst [vmem:[%s1860_s26 + $0x10] sm:$0x7f] %v1039_v57  ;;  %v1090_v61 = vsub.f32 0.0, %v1039_v57  ;;  %v970_v63 = vadd.f32 %v969_v58, %v896_v51  ;;  %v1041_v0 = vadd.f32 %v1040_v59, %v896_v51 }
 0x1ee   : > { %v1047_v62 = vand.u32 2147483647, %v968_v56  ;;  %v1062_v1 = vsub.s32 %v1059_v55, %v1844_v34  ;;  %v1049_v3 = vand.u32 2147483647, %v1039_v57  ;;  %vm1889_vm3 = vcmp.lt.s32.totalorder %v877_v32, 512 }
 0x1ef   : > { %v1092_v2 = vmul.f32 1.442695, %v1088_v60  ;;  %v1096_v4 = vmul.f32 1.442695, %v1090_v61  ;;  %1044 = vst [vmem:[%s1860_s26 + $0x8] sm:$0x7f] %v970_v63 }
 0x1f0   : > { %v1048_v5 = vand.u32 2147483647, %v970_v63  ;;  %v1089_v6 = vsub.f32 0.0, %v970_v63  ;;  %1046 = vst [vmem:[%s1860_s26 + $0x18] sm:$0x7f] %v1041_v0  ;;  %v1091_v8 = vsub.f32 0.0, %v1041_v0 }
 0x1f1   : > { %v1050_v7 = vand.u32 2147483647, %v1041_v0  ;;  %1463 = vpow2.f32 %v1092_v2 }
 0x1f2   : > { %1465 = vpow2.f32 %v1096_v4  ;;  %v1055_v9 = vcombine.low %v1047_v62, %v1048_v5  ;;  %v1094_v10 = vmul.f32 1.442695, %v1089_v6  ;;  %v1098_v12 = vmul.f32 1.442695, %v1091_v8 }
 0x1f3   : > { %v1056_v11 = vcombine.low %v1049_v3, %v1050_v7 }
 0x1f4   : > { %v1063_v13 = vrot.slane %v1055_v9, %v1062_v1  ;;  %1467 = vpow2.f32 %v1094_v10 }
 0x1f5   : > { %v1070_v14 = vrot.slane %v1056_v11, %v1062_v1  ;;  %1469 = vpow2.f32 %v1098_v12 }
 0x1f7   : > { %v1071_v15 = vcombine.high %v1063_v13, %v1070_v14 }
 0x1f9   : > { %v1078_v16 = vrot.slane %v1071_v15, %v1062_v1 }
 0x1fb   : > { %v1079_v18 = vcombine.high %v1078_v16, %v1078_v16 }
 0x1fd   : > { %1353 = vst.msk [vmem:[%s1860_s26 + $0x3] ss:$8 sm:$0xf] %vm1889_vm3, %v1079_v18 }
 0x1fe   : > { %v1464_v19 = vpop.eup %1463 }
 0x1ff   : > { %v1466_v20 = vpop.eup %1465  ;;  %v1100_v21 = vadd.f32 1.0, %v1464_v19 }
 0x200   : > { %v1102_v22 = vadd.f32 1.0, %v1466_v20 }
 0x201   : > { %v1468_v23 = vpop.eup %1467  ;;  %1471 = vrcp.f32 %v1100_v21 }
 0x202   : > { %v1470_v24 = vpop.eup %1469  ;;  %v1101_v25 = vadd.f32 1.0, %v1468_v23  ;;  %1473 = vrcp.f32 %v1102_v22 }
 0x203   : > { %v1103_v26 = vadd.f32 1.0, %v1470_v24 }
 0x204   : > { %1475 = vrcp.f32 %v1101_v25 }
 0x205   : > { %1477 = vrcp.f32 %v1103_v26 }
 0x20e   : > { %v1472_v27 = vpop.eup %1471 }
 0x20f   : > { %v1474_v28 = vpop.eup %1473 }
 0x211   : > { %v1476_v29 = vpop.eup %1475 }
 0x212   : > { %v1478_v30 = vpop.eup %1477  ;;  %v1116_v31 = vcombine.high %v1472_v27, %v1476_v29 }
 0x213   : > { %v1117_v32 = vcombine.high %v1474_v28, %v1478_v30 }
 0x214   : > { %v1124_v33 = vrot.slane %v1116_v31, %v1062_v1 }
 0x215   : > { %v1131_v34 = vrot.slane %v1117_v32, %v1062_v1 }
 0x217   : > { %v1132_v35 = vcombine.low %v1124_v33, %v1131_v34 }
 0x219   : > { %v1139_v36 = vrot.slane %v1132_v35, %v1062_v1 }
 0x21b   : > { %1354 = vst.msk [vmem:[%s1860_s26 + $0x4] ss:$8 sm:$0xf] %vm1889_vm3, %v1139_v36 }
 0x21c PF: > { %p1378_p5 = scmp.ge.s32.totalorder %s1569_s12, 2  ;;  %s1200_s19 = sand.u32 1, %s1557_s30  }
 0x21d   : > { %s1201_s23 = scalar_lea.sflag [#allocation3], %s1200_s19 }
 0x21e   : > { %p1372_p1 = pnand %p1378_p5, %p1671_p6 }
 0x220   : > { %p1373_p2 = pneg %p1372_p1 }
 0x222   : > { %1548 = dma.done.wait (%p1373_p2), %s1201_s23, 2048  }
 0x223   : > { %1550 = vsyncadd (%p1373_p2), %s1201_s23, 4294965248  ;;  %s1210_s25 = scalar_lea.sflag [#allocation5], %s1200_s19 }
 0x224   : > { %1552 = dma.done.wait (%p1373_p2), %s1210_s25, 128  }
 0x225   : > { %1554 = vsyncadd (%p1373_p2), %s1210_s25, 4294967168  ;;  %p23_p3 = scmp.ge.s32.totalorder %s1654_s15, 4   ;;  %s1933_s30 = smov %s1561_s10 }
 0x226   : > { %s1934_s10 = smov %s1565_s11  ;;  %s1935_s11 = smov %s1665_s18 }
 0x227   : > { %s1936_s12 = smov %s1654_s15  ;;  %25 = sbr.rel (!%p23_p3) target bundleno = 7 (0x7), region = 114 }
 0x22c   :  { %1223 = vsyncpa [#allocation3], 1 }
 0x22d   :  { %1225 = vsyncpa [#allocation3 + $0x1], 1 }
 0x22e   :  { %1226 = vsyncpa [#allocation5], 1 }
 0x22f   :  { %1228 = vsyncpa [#allocation5 + $0x1], 1 }

</bundles_post_ra>
